<compile_context>
chip_gen: v5e
topology: v5e:2x2
jax: 0.10.0
libtpu: 0.0.40
codegen_flags: <defaults>
</compile_context>

<pallas_src>
import jax
import jax.numpy as jnp
from jax.experimental import pallas as pl
from jax.experimental.pallas import tpu as pltpu


def _round_up(x, m):
    return ((x + m - 1) // m) * m


def _invariant_spec(shape, index_map):
    """BlockSpec for a grid-invariant weight block: single-buffer it."""
    try:
        return pl.BlockSpec(shape, index_map, pipeline_mode=pl.Buffered(1))
    except TypeError:  # older jax without the pipeline_mode kwarg
        return pl.BlockSpec(shape, index_map)


def _pick_vmem_limit():
    """Raise scoped-VMEM toward physical, leaving compiler headroom."""
    try:
        cap = pltpu.get_tpu_info().vmem_capacity_bytes
    except Exception:
        return 64 * 1024 * 1024
    return int(min(96 * 1024 * 1024, cap * 7 // 8))


# ----------------------------- Pallas kernel -----------------------------

def _fused_forward_kernel(x_ref, wbb_ref, bbb_ref, a_ref, b_ref, r_ref,
                          hw_ref, hb_ref, o_ref, acc_ref):
    """Per (N-tile, K-tile) fused pipeline (intermediates stay in VMEM/vregs):

         acc    += x_k @ W_bb_k                               # K-tiled backbone dense
         -- at last K step --
         h       = gelu(acc + b_bb)
         adapted = h + ((h @ A_all) * routing_exp) @ B_all    # soft LoRA mix, all tasks
         out     = adapted @ W_heads_all + b_heads_all        # all task heads, lane-dense

    Matmuls run bf16 on the MXU with f32 accumulation; VPU work is f32
    (v5e has no bf16 VPU).
    """
    k = pl.program_id(1)

    @pl.when(k == 0)
    def _():
        acc_ref[...] = jnp.zeros_like(acc_ref)

    # backbone dense, K-tiled accumulation (x already bf16 from the wrapper)
    acc_ref[...] += jnp.dot(x_ref[...], wbb_ref[...],
                            preferred_element_type=jnp.float32)     # [tN, H] f32

    @pl.when(k == pl.num_programs(1) - 1)
    def _():
        # (tanh-approx GELU; PyTorch nn.GELU default is the erf form — close
        #  enough for this synthetic backbone stand-in.)
        h = jax.nn.gelu(acc_ref[...] + bbb_ref[...], approximate=True)  # [tN, H] f32

        # --- soft-routed LoRA adapters, all tasks fused (TR padded to 128) ---
        lo = jnp.dot(h.astype(jnp.bfloat16), a_ref[...],
                     preferred_element_type=jnp.float32)            # [tN, TR_pad]
        lo = lo * r_ref[...]                                        # per-token routing (f32)
        adapted = h + jnp.dot(lo.astype(jnp.bfloat16), b_ref[...],
                              preferred_element_type=jnp.float32)   # [tN, H]

        # --- all task heads as one lane-dense matmul (TO padded to 128) ---
        o_ref[...] = (jnp.dot(adapted.astype(jnp.bfloat16), hw_ref[...],
                              preferred_element_type=jnp.float32)
                      + hb_ref[...]).astype(o_ref.dtype)            # [tN, TO_pad]


# ----------------------------- pallas_call wrapper -----------------------------

def fused_forward(x_flat, r_exp, w_bb, b_bb, a_all, b_all, hw_all, hb_all,
                  *, tile_n_max=512):
    """x_flat: [N, H] bf16, r_exp: [N, TR_pad] f32, weights pre-packed/padded."""
    N, H = x_flat.shape
    TR = a_all.shape[1]    # already padded to a multiple of 128
    TO = hw_all.shape[1]   # already padded to a multiple of 128

    # --- N tiling: multiple of 8, large (amortizes ~0.35us/grid-step overhead),
    #     but at least 2 tiles when possible so v7x's two TensorCores both work.
    n_pad = _round_up(N, 8)
    tile_n = min(tile_n_max, n_pad)
    if n_pad // tile_n < 2 and n_pad >= 16:
        tile_n = _round_up(n_pad // 2, 8)
    n_pad = _round_up(N, tile_n)
    if n_pad != N:
        x_flat = jnp.pad(x_flat, ((0, n_pad - N), (0, 0)))
        r_exp = jnp.pad(r_exp, ((0, n_pad - N), (0, 0)))

    # --- K tiling of the [H, H] backbone matmul (fits W_bb slab in VMEM at
    #     production H; demo H=32 -> single K step).
    tile_k = H
    if H % 128 == 0:
        for cand in (512, 384, 256, 128):
            if H % cand == 0:
                tile_k = cand
                break
    k_tiles = H // tile_k

    out = pl.pallas_call(
        _fused_forward_kernel,
        out_shape=jax.ShapeDtypeStruct((n_pad, TO), jnp.float32),
        grid_spec=pltpu.PrefetchScalarGridSpec(
            num_scalar_prefetch=0,
            grid=(n_pad // tile_n, k_tiles),
            in_specs=[
                pl.BlockSpec((tile_n, tile_k), lambda i, k: (i, k)),   # x tile (bf16)
                pl.BlockSpec((tile_k, H), lambda i, k: (k, 0)),        # W_bb K-slab (bf16)
                _invariant_spec((1, H), lambda i, k: (0, 0)),          # b_bb (f32)
                _invariant_spec((H, TR), lambda i, k: (0, 0)),         # A_all (bf16)
                _invariant_spec((TR, H), lambda i, k: (0, 0)),         # B_all (bf16)
                pl.BlockSpec((tile_n, TR), lambda i, k: (i, 0)),       # routing (f32)
                _invariant_spec((H, TO), lambda i, k: (0, 0)),         # W_heads_all (bf16)
                _invariant_spec((1, TO), lambda i, k: (0, 0)),         # b_heads_all (f32)
            ],
            out_specs=pl.BlockSpec((tile_n, TO), lambda i, k: (i, 0)),
            scratch_shapes=[pltpu.VMEM((tile_n, H), jnp.float32)],     # pre-GELU accumulator
        ),
        compiler_params=pltpu.CompilerParams(
            dimension_semantics=("parallel", "arbitrary"),
            vmem_limit_bytes=_pick_vmem_limit(),
        ),
    )(x_flat, w_bb, b_bb, a_all, b_all, r_exp, hw_all, hb_all)
    return out[:N]


# ----------------------------- forward pass -----------------------------

def random_routing_forward(input_ids, attention_mask, params, task_names, rng):
    B, S = input_ids.shape
    H = params["emb_table"].shape[1]
    T = len(task_names)
    R = params["lora_a"].shape[-1]
    O = params["head_w"].shape[-1]
    N = B * S

    # --- backbone embedding gather + attention mask (glue; no Pallas gather) ---
    emb = params["emb_table"][input_ids]                               # [B, S, H] f32
    if attention_mask is not None:
        emb = emb * attention_mask[..., None].astype(emb.dtype)
    # cast to bf16 at the boundary: x is only ever consumed by the bf16 MXU matmul
    x_flat = emb.reshape(N, H).astype(jnp.bfloat16)

    # --- random routing: torch.rand(B, T) -> softmax over tasks ---
    routing_probs = jax.nn.softmax(
        jax.random.uniform(rng, (B, T), dtype=jnp.float32), axis=-1)   # [B, T]

    # per-token, per-rank routing weights, padded lane-dense to [N, TR_pad]
    TR, TO = T * R, T * O
    TR_pad = _round_up(TR, 128)
    TO_pad = _round_up(TO, 128)
    routing_tok = jnp.repeat(routing_probs, S, axis=0)                 # [N, T]
    r_exp = jnp.repeat(routing_tok, R, axis=1)                         # [N, T*R]
    r_exp = jnp.pad(r_exp, ((0, 0), (0, TR_pad - TR)))                 # [N, TR_pad]

    # --- pack weights for the fused kernel (bf16 for MXU / halved DMA) ---
    # TODO(synk): DynamoModel adapter internals not specified; LoRA soft-mix +
    # per-task linear heads is the assumed DYNAMO adapter semantics.
    # TODO(synk): on v7x, fp8 weight storage (bf16 x fp8 MXU) would halve W_bb
    # residency further; left out pending accuracy verification.
    w_bb = params["w_bb"].astype(jnp.bfloat16)                         # [H, H]
    b_bb = params["b_bb"].astype(jnp.float32)                          # [1, H]
    a_all = jnp.transpose(params["lora_a"], (1, 0, 2)).reshape(H, TR)
    a_all = jnp.pad(a_all, ((0, 0), (0, TR_pad - TR))).astype(jnp.bfloat16)
    b_all = params["lora_b"].reshape(TR, H)
    b_all = jnp.pad(b_all, ((0, TR_pad - TR), (0, 0))).astype(jnp.bfloat16)
    hw_all = jnp.transpose(params["head_w"], (1, 0, 2)).reshape(H, TO)
    hw_all = jnp.pad(hw_all, ((0, 0), (0, TO_pad - TO))).astype(jnp.bfloat16)
    hb_all = params["head_b"].reshape(1, TO).astype(jnp.float32)
    hb_all = jnp.pad(hb_all, ((0, 0), (0, TO_pad - TO)))

    outs = fused_forward(x_flat, r_exp, w_bb, b_bb, a_all, b_all,
                         hw_all, hb_all)                               # [N, TO_pad]

    task_outputs = {
        name: outs[:, t * O:(t + 1) * O].reshape(B, S, O)
        for t, name in enumerate(task_names)
    }
    return {"task_outputs": task_outputs, "routing_probs": routing_probs}


# ----------------------------- main -----------------------------

if __name__ == "__main__":
    B, S, H = 2, 8, 32
    VOCAB, RANK, OUT = 64, 8, 16
    TASK_NAMES = ("sentiment", "qa", "summarization")
    T = len(TASK_NAMES)

    key = jax.random.PRNGKey(0)
    k_ids, k_route, k_emb, k_w, k_a, k_b, k_hw = jax.random.split(key, 7)

    input_ids = jax.random.randint(k_ids, (B, S), 0, VOCAB)
    attention_mask = jnp.ones((B, S), dtype=jnp.float32)

    params = {
        "emb_table": jax.random.normal(k_emb, (VOCAB, H), jnp.float32) * 0.02,
        "w_bb": jax.random.normal(k_w, (H, H), jnp.float32) * 0.02,
        "b_bb": jnp.zeros((1, H), jnp.float32),
        "lora_a": jax.random.normal(k_a, (T, H, RANK), jnp.float32) * 0.02,
        "lora_b": jax.random.normal(k_b, (T, RANK, H), jnp.float32) * 0.02,
        "head_w": jax.random.normal(k_hw, (T, H, OUT), jnp.float32) * 0.02,
        "head_b": jnp.zeros((T, 1, OUT), jnp.float32),
    }

    result = random_routing_forward(input_ids, attention_mask, params, TASK_NAMES, k_route)
    jax.block_until_ready(result)

    # sanity on shapes
    assert result["routing_probs"].shape == (B, T)
    for name in TASK_NAMES:
        assert result["task_outputs"][name].shape == (B, S, OUT)

    print("KERNEL_OK")
</pallas_src>

<mosaic_0001>
module attributes {stable_mosaic.version = 11 : i64} {
  func.func @_fused_forward_kernel(%arg0: i32, %arg1: i32, %arg2: memref<8x32xbf16, #tpu.memory_space<vmem>>, %arg3: memref<32x32xbf16, #tpu.memory_space<vmem>>, %arg4: memref<1x32xf32, #tpu.memory_space<vmem>>, %arg5: memref<32x128xbf16, #tpu.memory_space<vmem>>, %arg6: memref<128x32xbf16, #tpu.memory_space<vmem>>, %arg7: memref<8x128xf32, #tpu.memory_space<vmem>>, %arg8: memref<32x128xbf16, #tpu.memory_space<vmem>>, %arg9: memref<1x128xf32, #tpu.memory_space<vmem>>, %arg10: memref<8x128xf32, #tpu.memory_space<vmem>>, %arg11: memref<8x32xf32, #tpu.memory_space<vmem>>) attributes {dimension_semantics = [#tpu.dimension_semantics<parallel>, #tpu.dimension_semantics<arbitrary>], iteration_bounds = array<i64: 2, 1>, scalar_prefetch = 0 : i64, scratch_operands = 1 : i64, tpu.core_type = #tpu.core_type<tc>, window_params = [{transform_indices = @transform_0, window_bounds = array<i64: 8, 32>}, {transform_indices = @transform_1, window_bounds = array<i64: 32, 32>}, {pipeline_mode = #tpu.pipeline_mode<synchronous>, transform_indices = @transform_2, window_bounds = array<i64: 1, 32>}, {pipeline_mode = #tpu.pipeline_mode<synchronous>, transform_indices = @transform_3, window_bounds = array<i64: 32, 128>}, {pipeline_mode = #tpu.pipeline_mode<synchronous>, transform_indices = @transform_4, window_bounds = array<i64: 128, 32>}, {transform_indices = @transform_5, window_bounds = array<i64: 8, 128>}, {pipeline_mode = #tpu.pipeline_mode<synchronous>, transform_indices = @transform_6, window_bounds = array<i64: 32, 128>}, {pipeline_mode = #tpu.pipeline_mode<synchronous>, transform_indices = @transform_7, window_bounds = array<i64: 1, 128>}, {transform_indices = @transform_8, window_bounds = array<i64: 8, 128>}]} {
    %c0_i32 = arith.constant 0 : i32
    %0 = arith.cmpi eq, %arg1, %c0_i32 : i32
    %1 = arith.extui %0 : i1 to i32
    %c0_i32_0 = arith.constant 0 : i32
    %2 = arith.cmpi ne, %1, %c0_i32_0 : i32
    scf.if %2 {
      %cst_10 = arith.constant 0.000000e+00 : f32
      %12 = vector.broadcast %cst_10 : f32 to vector<8x32xf32>
      %c0_11 = arith.constant 0 : index
      %c0_12 = arith.constant 0 : index
      %13 = vector.load %arg11[%c0_11, %c0_12] : memref<8x32xf32, #tpu.memory_space<vmem>>, vector<8x32xf32>
      tpu.vector_store %arg11[%c0_11, %c0_12], %12 {strides = array<i32>} : memref<8x32xf32, #tpu.memory_space<vmem>>, vector<8x32xf32>,
    } else {
    }
    %c0 = arith.constant 0 : index
    %c0_1 = arith.constant 0 : index
    %3 = vector.load %arg11[%c0, %c0_1] : memref<8x32xf32, #tpu.memory_space<vmem>>, vector<8x32xf32>
    %c0_2 = arith.constant 0 : index
    %c0_3 = arith.constant 0 : index
    %4 = vector.load %arg2[%c0_2, %c0_3] : memref<8x32xbf16, #tpu.memory_space<vmem>>, vector<8x32xbf16>
    %c0_4 = arith.constant 0 : index
    %c0_5 = arith.constant 0 : index
    %5 = vector.load %arg3[%c0_4, %c0_5] : memref<32x32xbf16, #tpu.memory_space<vmem>>, vector<32x32xbf16>
    %cst = arith.constant dense<0.000000e+00> : vector<8x32xf32>
    %6 = tpu.matmul %4, %5, %cst {dimension_numbers = #tpu.dot_dimension_numbers<[1], [0], [0], [1], [0, 0, 1, 1], [], []>} : vector<8x32xbf16>, vector<32x32xbf16>, vector<8x32xf32> -> vector<8x32xf32>
    %7 = arith.addf %3, %6 : vector<8x32xf32>
    %c0_6 = arith.constant 0 : index
    %c0_7 = arith.constant 0 : index
    %8 = vector.load %arg11[%c0_6, %c0_7] : memref<8x32xf32, #tpu.memory_space<vmem>>, vector<8x32xf32>
    tpu.vector_store %arg11[%c0_6, %c0_7], %7 {strides = array<i32>} : memref<8x32xf32, #tpu.memory_space<vmem>>, vector<8x32xf32>,
    %c0_i32_8 = arith.constant 0 : i32
    %9 = arith.cmpi eq, %arg1, %c0_i32_8 : i32
    %10 = arith.extui %9 : i1 to i32
    %c0_i32_9 = arith.constant 0 : i32
    %11 = arith.cmpi ne, %10, %c0_i32_9 : i32
    scf.if %11 {
      %c0_10 = arith.constant 0 : index
      %c0_11 = arith.constant 0 : index
      %12 = vector.load %arg11[%c0_10, %c0_11] : memref<8x32xf32, #tpu.memory_space<vmem>>, vector<8x32xf32>
      %c0_12 = arith.constant 0 : index
      %c0_13 = arith.constant 0 : index
      %13 = vector.load %arg4[%c0_12, %c0_13] : memref<1x32xf32, #tpu.memory_space<vmem>>, vector<1x32xf32>
      %14 = vector.broadcast %13 : vector<1x32xf32> to vector<8x32xf32>
      %15 = arith.addf %12, %14 : vector<8x32xf32>
      %16 = arith.mulf %15, %15 : vector<8x32xf32>
      %17 = arith.mulf %15, %16 : vector<8x32xf32>
      %cst_14 = arith.constant 4.471500e-02 : f32
      %18 = vector.broadcast %cst_14 : f32 to vector<8x32xf32>
      %19 = arith.mulf %18, %17 : vector<8x32xf32>
      %20 = arith.addf %15, %19 : vector<8x32xf32>
      %cst_15 = arith.constant 0.797884583 : f32
      %21 = vector.broadcast %cst_15 : f32 to vector<8x32xf32>
      %22 = arith.mulf %21, %20 : vector<8x32xf32>
      %23 = math.tanh %22 : vector<8x32xf32>
      %cst_16 = arith.constant 1.000000e+00 : f32
      %24 = vector.broadcast %cst_16 : f32 to vector<8x32xf32>
      %25 = arith.addf %24, %23 : vector<8x32xf32>
      %cst_17 = arith.constant 5.000000e-01 : f32
      %26 = vector.broadcast %cst_17 : f32 to vector<8x32xf32>
      %27 = arith.mulf %26, %25 : vector<8x32xf32>
      %28 = arith.mulf %15, %27 : vector<8x32xf32>
      %29 = arith.truncf %28 : vector<8x32xf32> to vector<8x32xbf16>
      %c0_18 = arith.constant 0 : index
      %c0_19 = arith.constant 0 : index
      %30 = vector.load %arg5[%c0_18, %c0_19] : memref<32x128xbf16, #tpu.memory_space<vmem>>, vector<32x128xbf16>
      %cst_20 = arith.constant dense<0.000000e+00> : vector<8x128xf32>
      %31 = tpu.matmul %29, %30, %cst_20 {dimension_numbers = #tpu.dot_dimension_numbers<[1], [0], [0], [1], [0, 0, 1, 1], [], []>} : vector<8x32xbf16>, vector<32x128xbf16>, vector<8x128xf32> -> vector<8x128xf32>
      %c0_21 = arith.constant 0 : index
      %c0_22 = arith.constant 0 : index
      %32 = vector.load %arg7[%c0_21, %c0_22] : memref<8x128xf32, #tpu.memory_space<vmem>>, vector<8x128xf32>
      %33 = arith.mulf %31, %32 : vector<8x128xf32>
      %34 = arith.truncf %33 : vector<8x128xf32> to vector<8x128xbf16>
      %c0_23 = arith.constant 0 : index
      %c0_24 = arith.constant 0 : index
      %35 = vector.load %arg6[%c0_23, %c0_24] : memref<128x32xbf16, #tpu.memory_space<vmem>>, vector<128x32xbf16>
      %cst_25 = arith.constant dense<0.000000e+00> : vector<8x32xf32>
      %36 = tpu.matmul %34, %35, %cst_25 {dimension_numbers = #tpu.dot_dimension_numbers<[1], [0], [0], [1], [0, 0, 1, 1], [], []>} : vector<8x128xbf16>, vector<128x32xbf16>, vector<8x32xf32> -> vector<8x32xf32>
      %37 = arith.addf %28, %36 : vector<8x32xf32>
      %38 = arith.truncf %37 : vector<8x32xf32> to vector<8x32xbf16>
      %c0_26 = arith.constant 0 : index
      %c0_27 = arith.constant 0 : index
      %39 = vector.load %arg8[%c0_26, %c0_27] : memref<32x128xbf16, #tpu.memory_space<vmem>>, vector<32x128xbf16>
      %cst_28 = arith.constant dense<0.000000e+00> : vector<8x128xf32>
      %40 = tpu.matmul %38, %39, %cst_28 {dimension_numbers = #tpu.dot_dimension_numbers<[1], [0], [0], [1], [0, 0, 1, 1], [], []>} : vector<8x32xbf16>, vector<32x128xbf16>, vector<8x128xf32> -> vector<8x128xf32>
      %c0_29 = arith.constant 0 : index
      %c0_30 = arith.constant 0 : index
      %41 = vector.load %arg9[%c0_29, %c0_30] : memref<1x128xf32, #tpu.memory_space<vmem>>, vector<1x128xf32>
      %42 = vector.broadcast %41 : vector<1x128xf32> to vector<8x128xf32>
      %43 = arith.addf %40, %42 : vector<8x128xf32>
      %c0_31 = arith.constant 0 : index
      %c0_32 = arith.constant 0 : index
      %44 = vector.load %arg10[%c0_31, %c0_32] : memref<8x128xf32, #tpu.memory_space<vmem>>, vector<8x128xf32>
      tpu.vector_store %arg10[%c0_31, %c0_32], %43 {strides = array<i32>} : memref<8x128xf32, #tpu.memory_space<vmem>>, vector<8x128xf32>,
    } else {
    }
    return
  }
  func.func @transform_0(%arg0: i32, %arg1: i32) -> (i32, i32) {
    %c0_i32 = arith.constant 0 : i32
    return %arg0, %arg1 : i32, i32
  }
  func.func @transform_1(%arg0: i32, %arg1: i32) -> (i32, i32) {
    %c0_i32 = arith.constant 0 : i32
    %c0_i32_0 = arith.constant 0 : i32
    return %arg1, %c0_i32 : i32, i32
  }
  func.func @transform_2(%arg0: i32, %arg1: i32) -> (i32, i32) {
    %c0_i32 = arith.constant 0 : i32
    %c0_i32_0 = arith.constant 0 : i32
    %c0_i32_1 = arith.constant 0 : i32
    return %c0_i32, %c0_i32_0 : i32, i32
  }
  func.func @transform_3(%arg0: i32, %arg1: i32) -> (i32, i32) {
    %c0_i32 = arith.constant 0 : i32
    %c0_i32_0 = arith.constant 0 : i32
    %c0_i32_1 = arith.constant 0 : i32
    return %c0_i32, %c0_i32_0 : i32, i32
  }
  func.func @transform_4(%arg0: i32, %arg1: i32) -> (i32, i32) {
    %c0_i32 = arith.constant 0 : i32
    %c0_i32_0 = arith.constant 0 : i32
    %c0_i32_1 = arith.constant 0 : i32
    return %c0_i32, %c0_i32_0 : i32, i32
  }
  func.func @transform_5(%arg0: i32, %arg1: i32) -> (i32, i32) {
    %c0_i32 = arith.constant 0 : i32
    %c0_i32_0 = arith.constant 0 : i32
    return %arg0, %c0_i32 : i32, i32
  }
  func.func @transform_6(%arg0: i32, %arg1: i32) -> (i32, i32) {
    %c0_i32 = arith.constant 0 : i32
    %c0_i32_0 = arith.constant 0 : i32
    %c0_i32_1 = arith.constant 0 : i32
    return %c0_i32, %c0_i32_0 : i32, i32
  }
  func.func @transform_7(%arg0: i32, %arg1: i32) -> (i32, i32) {
    %c0_i32 = arith.constant 0 : i32
    %c0_i32_0 = arith.constant 0 : i32
    %c0_i32_1 = arith.constant 0 : i32
    return %c0_i32, %c0_i32_0 : i32, i32
  }
  func.func @transform_8(%arg0: i32, %arg1: i32) -> (i32, i32) {
    %c0_i32 = arith.constant 0 : i32
    %c0_i32_0 = arith.constant 0 : i32
    return %arg0, %c0_i32 : i32, i32
  }
}

</mosaic_0001>

<bundles_post_ra>
// kernel: tpu_custom_call.1
= control target key start
LH: loop header
LB: loop body
LE: loop exit
PB: predicated region body
PF: predicated region fallthrough
CT: control target
= control target key end

     0   :  { %s1119_s0 = inlined_call_operand.vmem [shape: bf16[16,32], index: 0, kind: input, shape index: {}]   ;;  %s1120_s1 = inlined_call_operand.vmem [shape: bf16[32,32], index: 1, kind: input, shape index: {}]   ;;  %s1121_s2 = inlined_call_operand.vmem [shape: f32[1,32], index: 2, kind: input, shape index: {}]   ;;  %s1122_s3 = inlined_call_operand.vmem [shape: bf16[32,128], index: 3, kind: input, shape index: {}]   ;;  %s1123_s4 = inlined_call_operand.vmem [shape: bf16[128,32], index: 4, kind: input, shape index: {}]   ;;  %s1124_s5 = inlined_call_operand.vmem [shape: f32[16,128], index: 5, kind: input, shape index: {}]   ;;  %s1125_s6 = inlined_call_operand.vmem [shape: bf16[32,128], index: 6, kind: input, shape index: {}]   ;;  %s1126_s7 = inlined_call_operand.vmem [shape: f32[1,128], index: 7, kind: input, shape index: {}]   ;;  %s1127_s8 = inlined_call_operand.hbm [shape: f32[16,128], index: 8, kind: output, shape index: {}]  }
   0x1   :  { %1128 = sst [smem:[#allocation6_spill]] %s1119_s0 }
   0x2   :  { %13 = vsyncpa [#allocation4], 0 }
   0x3   :  { %15 = vsyncpa [#allocation4 + $0x1], 0  ;;  %s962_s27 = smov 0   ;;  %s964_s28 = smov 0  }
   0x4   :  { %s966_s29 = smov 0   ;;  %s968_s30 = smov 0  }
   0x5   :  { %s970_s9 = smov 0   ;;  %s972_s10 = smov 0  }
   0x6 LB: > { %s690_s11 = sadd.s32 4294967295, %s914_s10   ;;  %s691_s12 = sadd.s32 4294967294, %s914_s10   ;;  %s914_s10 = sphi %s972_s10, %s21_s10   ;;  %s910_s9 = sphi %s970_s9, %s1136_s9   ;;  %s906_s30 = sphi %s968_s30, %s1135_s30   ;;  %s902_s29 = sphi %s966_s29, %s1134_s29   ;;  %s898_s28 = sphi %s964_s28, %s1133_s28   ;;  %s894_s27 = sphi %s962_s27, %s1132_s27  }
   0x7   : > { %s33_s13 = sadd.s32 1, %s910_s9  ;;  %s225_s14 = sadd.s32 1, %s902_s29 }
   0x8   : > { %p35_p0 = scmp.ge.s32.totalorder %s33_s13, 2  ;;  %p235_p1 = scmp.ne.s32.totalorder %s902_s29, %s898_s28 }
   0x9   : > { %p236_p2 = scmp.eq.s32.totalorder %s690_s11, 1  ;;  %p241_p3 = scmp.ne.s32.totalorder %s898_s28, %s894_s27 }
   0xa   : > { %s1138_s13 = smov (%p35_p0, %s33_s13), 0  ;;  %p242_p5 = scmp.eq.s32.totalorder %s691_s12, 1 }
   0xb   : > { %p1002_p4 = por %p236_p2, %p235_p1  ;;  %s222_s16 = ssub.s32 %s910_s9, %s1138_s13 }
   0xc   : > { %p695_p6 = scmp.ge.s32.totalorder %s914_s10, 1  ;;  %p223_p7 = scmp.eq.s32.totalorder %s222_s16, 0 }
   0xd   : > { %p1009_p8 = por %p242_p5, %p241_p3  ;;  %p301_p9 = scmp.lt.s32.totalorder %s914_s10, 3 }
   0xe   : > { %s1015_s18 = scalar_select %p223_p7, %s902_s29, %s225_s14  }
   0xf   : > { %p302_p10 = pnand %p695_p6, %p301_p9 }
  0x10   : > { %p346_p11 = scmp.lt.s32.totalorder (!%p302_p10), %s906_s30, 1  ;;  %s1131_s0 = sld [smem:[#allocation6_spill]] (!%p302_p10) }
  0x11   : > { %305 = sbr.rel (%p302_p10) target bundleno = 599 (0x257), region = 52  ;;  %s759_s25 = sshll.u32 (!%p302_p10), %s906_s30, 3 }
  0x12   : > { %s588_s14 = scalar_lea.hbm (!%p302_p10), %s1127_s8, %s759_s25  ;;  %s856_s12 = scalar_lea.hbm (!%p302_p10), %s1127_s8, 16 }
  0x13   : > { %s592_s22 = sshll.u32 (!%p302_p10), %s588_s14, 4  ;;  %s593_s22 = int_to_ptr.hbm [resolvable:$true] %s592_s22 }
  0x16   : > { %v763_v0 = vld [vmem:[%s1120_s1 + $0x8] sm:$0xff]  ;;  %vm368_vm0 = vcmask 261120   ;;  %v916_v1 = vmov 0.0   ;;  %v762_v2 = vld [vmem:[%s1120_s1] sm:$0xff]  ;;  %s1026_s23 = scalar_select %p346_p11, %s906_s30, 1  ;;  %v773_v9 = vld [vmem:[%s1123_s4 + $0x38] sm:$0xff] }
  0x17   : > { %369 = vst.msk [vmem:[#allocation2] sm:$0xff] %vm368_vm0, %v916_v1  ;;  %398 = vmatpush.bf16.msra.mxu0 %v763_v0  ;;  %v765_v4 = vld [vmem:[%s1122_s3 + $0x8] sm:$0xff]  ;;  %v764_v5 = vld [vmem:[%s1122_s3] sm:$0xff]  ;;  %525 = vmatpush.bf16.msra.mxu2 %v773_v9  ;;  %v772_v12 = vld [vmem:[%s1123_s4 + $0x30] sm:$0xff]  ;;  %s850_s30 = sshra.s32 %s593_s22, 4  ;;  %s851_s30 = int_to_ptr.hbm [resolvable:$true] %s850_s30 }
  0x18   : > { %s697_s24 = sshll.u32 %s1026_s23, 2  ;;  %451 = vmatpush.bf16.msra.mxu1 %v765_v4  ;;  %v832_v10 = vld [vmem:[%s1121_s2] ss:$0 sm:$0xff]  ;;  %v771_v15 = vld [vmem:[%s1123_s4 + $0x28] sm:$0xff]  ;;  %v769_v21 = vld [vmem:[%s1123_s4 + $0x18] sm:$0xff]  ;;  %s698_s16 = sshll.u32 %s1026_s23, 3 }
  0x19   : > { %s352_s11 = scalar_lea.vmem %s1131_s0, %s697_s24  ;;  %v770_v18 = vld [vmem:[%s1123_s4 + $0x20] sm:$0xff]  ;;  %v768_v23 = vld [vmem:[%s1123_s4 + $0x10] sm:$0xff]  ;;  %v767_v24 = vld [vmem:[%s1123_s4 + $0x8] sm:$0xff]  ;;  %s362_s21 = scalar_lea.vmem %s1124_s5, %s698_s16 }
  0x1a   : > { %v371_v3 = vld [vmem:[%s352_s11] sm:$0xf]  ;;  %v775_v31 = vld [vmem:[%s1125_s6 + $0x8] sm:$0xff]  ;;  %s343_s23 = sand.u32 1, %s898_s28   ;;  %s852_s0 = scalar_lea.hbm %s851_s30, 8 }
  0x1b   : > { %399 = vmatpush.bf16.msra.mxu0 %v762_v2  ;;  %526 = vmatpush.bf16.msra.mxu2 %v772_v12  ;;  %v766_v30 = vld [vmem:[%s1123_s4] sm:$0xff]  ;;  %s696_s26 = sshll.u32 %s343_s23, 3  ;;  %s578_s24 = scalar_lea.sflag [#allocation4], %s343_s23 }
  0x1c   : > { %452 = vmatpush.bf16.msra.mxu1 %v764_v5  ;;  %569 = vmatpush.bf16.msra.mxu3 %v775_v31  ;;  %v458_v32 = vld [vmem:[%s362_s21] sm:$0xff]  ;;  %s345_s20 = scalar_lea.vmem [#allocation3], %s696_s26  ;;  %p853_p12 = scmp.ne.s32.totalorder %s851_s30, %s852_s0 }
  0x1d   : > { %v774_v37 = vld [vmem:[%s1125_s6] sm:$0xff]  ;;  %s590_s21 = sshll.u32 %s345_s20, 4  ;;  %p857_p1 = scmp.lt.s32.totalorder %s851_s30, %s1127_s8  ;;  %s591_s21 = int_to_ptr.vmem [resolvable:$true] %s590_s21 }
  0x1e   : > { %707 = vmatmul.msk.bf16.vlgmr.msra.gmra.mxu0 %vm368_vm0, %v371_v3  ;;  %v370_v6 = vld [vmem:[#allocation2] sm:$0xff]  ;;  %p854_p13 = pnand %p853_p12, %p1002_p4  ;;  %p858_p2 = scmp.lt.s32.totalorder %s856_s12, %s852_s0 }
  0x1f   : > { %527 = vmatpush.bf16.msra.mxu2 %v771_v15  ;;  %v833_v42 = vld [vmem:[%s1126_s7] ss:$0 sm:$0xff] }
  0x20   : > { %570 = vmatpush.bf16.msra.mxu3 %v774_v37  ;;  %p855_p0 = pneg %p854_p13  ;;  %p859_p3 = por %p858_p2, %p857_p1 }
  0x22   : > { %p860_p5 = pnand %p859_p3, %p855_p0 }
  0x23   : > { %528 = vmatpush.bf16.msra.mxu2 %v770_v18 }
  0x27   : > { %529 = vmatpush.bf16.msra.mxu2 %v769_v21 }
  0x2b   : > { %530 = vmatpush.bf16.msra.mxu2 %v768_v23 }
  0x2f   : > { %531 = vmatpush.bf16.msra.mxu2 %v767_v24 }
  0x33   : > { %532 = vmatpush.bf16.msra.mxu2 %v766_v30 }
  0x9b   : > { %v401_v7 = vpop.f32.mrf.mxu0 }
  0x9c   : > { %v405_v8 = vadd.f32 %v401_v7, %v370_v6 }
  0x9e   : > { %406 = vst.msk [vmem:[#allocation2] sm:$0xff] %vm368_vm0, %v405_v8 }
  0xa3   : > { %v403_v11 = vpop.f32.mrf.mxu0 }
  0xa5   : > { %v410_v13 = vld [vmem:[#allocation2] sm:$0xff] }
  0xa6   : > { %v415_v14 = vadd.f32 %v832_v10, %v410_v13 }
  0xa8   : > { %v416_v16 = vmul.f32 %v415_v14, %v415_v14 }
  0xaa   : > { %v417_v17 = vmul.f32 %v416_v16, %v415_v14 }
  0xac   : > { %v418_v19 = vmul.f32 0.044715, %v417_v17 }
  0xae   : > { %v419_v20 = vadd.f32 %v418_v19, %v415_v14 }
  0xb0   : > { %v420_v22 = vmul.f32 0.7978846, %v419_v20 }
  0xb2   : > { %834 = vtanh.f32 %v420_v22 }
  0xb8   : > { %v835_v25 = vpop.eup %834 }
  0xb9   : > { %v422_v26 = vadd.f32 1.0, %v835_v25 }
  0xbb   : > { %v423_v27 = vmul.f32 0.5, %v422_v26 }
  0xbd   : > { %v424_v28 = vmul.f32 %v423_v27, %v415_v14 }
  0xbf   : > { %v425_v29 = vpack.c.bf16 %v424_v28, %v424_v28 }
  0xc1   : > { %716 = vmatmul.msk.bf16.vlgmr.msra.gmra.mxu1 %vm368_vm0, %v425_v29 }
 0x13e   : > { %v454_v33 = vpop.f32.mrf.mxu1 }
 0x13f   : > { %v459_v34 = vmul.f32 %v458_v32, %v454_v33 }
 0x141   : > { %v460_v35 = vpack.c.bf16 %v459_v34, %v459_v34 }
 0x143   : > { %533 = vmatmul.bf16.vlgmr.msra.gmra.mxu2 %v460_v35 }
 0x146   : > { %v456_v36 = vpop.f32.mrf.mxu1 }
 0x1c6   : > { %v534_v38 = vpop.f32.mrf.mxu2 }
 0x1c7   : > { %v538_v39 = vadd.f32 %v534_v38, %v424_v28 }
 0x1c9   : > { %v539_v40 = vpack.c.bf16 %v538_v39, %v538_v39 }
 0x1cb   : > { %757 = vmatmul.msk.bf16.vlgmr.msra.gmra.mxu3 %vm368_vm0, %v539_v40 }
 0x1ce   : > { %v536_v41 = vpop.f32.mrf.mxu2 }
 0x24e   : > { %v572_v43 = vpop.f32.mrf.mxu3 }
 0x24f   : > { %v573_v44 = vadd.f32 %v833_v42, %v572_v43 }
 0x251   : > { %576 = vst [vmem:[%s345_s20] sm:$0xff] %v573_v44 }
 0x252   : > { %863 = shalt.err (!%p860_p5)
}
 0x253   : > { %776 = dma.vmem_to_hbm [thread:$0]  (%p1002_p4), %s591_s21, 128, %s593_s22, %s578_s24  }
 0x256   : > { %v574_v45 = vpop.f32.mrf.mxu3 }
 0x257 PF: > { %p782_p6 = scmp.ge.s32.totalorder %s914_s10, 2  ;;  %s604_s23 = sand.u32 1, %s894_s27  }
 0x258   : > { %s605_s14 = scalar_lea.sflag [#allocation4], %s604_s23 }
 0x259   : > { %p779_p7 = pnand %p782_p6, %p1009_p8 }
 0x25b   : > { %p780_p9 = pneg %p779_p7 }
 0x25d   : > { %889 = dma.done.wait (%p780_p9), %s605_s14, 128  }
 0x25e   : > { %891 = vsyncadd (%p780_p9), %s605_s14, 4294967168  ;;  %s21_s10 = sadd.s32 1, %s914_s10   ;;  %s1132_s27 = smov %s898_s28 }
 0x25f   : > { %p18_p10 = scmp.ge.s32.totalorder %s21_s10, 4   ;;  %s1133_s28 = smov %s902_s29 }
 0x260   : > { %s1134_s29 = smov %s1015_s18  ;;  %s1135_s30 = smov %s910_s9 }
 0x261   : > { %s1136_s9 = smov %s1138_s13  ;;  %20 = sbr.rel (!%p18_p10) target bundleno = 6 (0x6), region = 101 }
 0x266   :  { %611 = vsyncpa [#allocation4], 1 }
 0x267   :  { %613 = vsyncpa [#allocation4 + $0x1], 1 }

</bundles_post_ra>
